<compile_context>
chip_gen: v7x
topology: tpu7x:2x2x1
jax: 0.10.0
libtpu: 0.0.40
codegen_flags: <defaults>
</compile_context>

<pallas_src>
import jax
import jax.numpy as jnp
from jax.experimental import pallas as pl
from jax.experimental.pallas import tpu as pltpu


def _copy_kernel(x_ref, o_ref):
    # Pure vld/vst stream: rank-matched block shapes, no in-kernel reshape.
    o_ref[...] = x_ref[...]


def _pick_lane_width(n_elems: int) -> int | None:
    """Largest lane width (multiple of 128, <=4096) that divides the element count."""
    for cand in (4096, 2048, 1024, 512, 256, 128):
        if n_elems % cand == 0:
            return cand
    return None


def _sublane_multiple(itemsize: int) -> int:
    """Rows per packed sublane group: 8 (f32), 16 (bf16/f16), 32 (int8/fp8)."""
    return 8 * max(1, 4 // max(1, itemsize))


def _chip_tuning() -> tuple[int, int | None, bool]:
    """Per-generation (target_tile_bytes, vmem_limit_bytes or None, multi_core)."""
    kind = ""
    try:
        kind = getattr(jax.devices()[0], "device_kind", "").lower()
    except Exception:
        pass
    if "v6" in kind:
        # v6e: 32 MiB scoped VMEM; 4 MiB tile (16 MiB double-buffered) ~roofline.
        return 4 << 20, None, False
    if "7" in kind and "v5" not in kind:
        # v7x: 3.2 TB/s HBM, 2 TensorCores, 64 MiB physical VMEM per TC.
        return 8 << 20, 48 << 20, True
    # v5e / unknown: keep 4x double-buffered tiles well under the 16 MiB scoped limit.
    return 2 << 20, None, False


def _pick_block_rows(rows: int, lane: int, itemsize: int,
                     target_bytes: int, multi_core: bool) -> int:
    """Sublane-aligned row-block with a ~target_bytes tile.  No divisibility
    requirement: the grid uses pl.cdiv and Pallas masks the partial last tile."""
    sub = _sublane_multiple(itemsize)
    bytes_per_row = lane * itemsize
    max_rows = max(sub, (target_bytes // bytes_per_row) // sub * sub)
    if rows <= max_rows:
        if multi_core and rows >= 2 * sub:
            # Split into >= 2 blocks so both v7x TensorCores stream in parallel.
            half = (rows + 1) // 2
            return ((half + sub - 1) // sub) * sub
        return rows          # one full-extent block (always layout-legal)
    return max_rows          # fixed tile; partial last tile handled by masking


def expand_temporal_dim(x_seq: jax.Array, T: int, *,
                        use_kernel: bool = True,
                        donate: bool = False) -> jax.Array:
    """(T*B, C, H, W) -> (T, B, C, H, W).

    use_kernel=False returns the free metadata reshape (zero HBM traffic) —
    preferred whenever this op does not need to act as a fusion anchor.
    """
    TB = x_seq.shape[0]
    assert TB % T == 0, "leading dim must be divisible by T"
    B = TB // T
    out_shape = (T, B) + tuple(x_seq.shape[1:])

    if not use_kernel:
        return x_seq.reshape(out_shape)

    n = x_seq.size
    itemsize = jnp.dtype(x_seq.dtype).itemsize

    lane = _pick_lane_width(n)
    if lane is None:
        # Element count not a multiple of 128: don't ship a giant (1, n) block
        # (un-pipelined, VMEM-OOM risk) — the op is a reshape, so return it.
        return x_seq.reshape(out_shape)

    rows = n // lane
    target_bytes, vmem_limit, multi_core = _chip_tuning()
    block_rows = _pick_block_rows(rows, lane, itemsize, target_bytes, multi_core)
    grid = (pl.cdiv(rows, block_rows),)

    # Free, metadata-only reshapes on both sides of the lane-dense 2D copy.
    x2d = x_seq.reshape(rows, lane)

    cp_kwargs = dict(dimension_semantics=("parallel",))
    if vmem_limit is not None:
        cp_kwargs["vmem_limit_bytes"] = int(vmem_limit)

    call_kwargs = {}
    if donate:
        # Only a win if the caller donates x_seq (jit donate_argnums); otherwise
        # XLA inserts a defensive copy.  The copy body is idempotent, so the
        # result is correct either way.
        call_kwargs["input_output_aliases"] = {0: 0}

    y2d = pl.pallas_call(
        _copy_kernel,
        out_shape=jax.ShapeDtypeStruct((rows, lane), x_seq.dtype),
        grid=grid,
        in_specs=[pl.BlockSpec((block_rows, lane), lambda i: (i, 0))],
        out_specs=pl.BlockSpec((block_rows, lane), lambda i: (i, 0)),
        compiler_params=pltpu.CompilerParams(**cp_kwargs),
        cost_estimate=pl.CostEstimate(flops=0, transcendentals=0,
                                      bytes_accessed=2 * n * itemsize),
        **call_kwargs,
    )(x2d)

    return y2d.reshape(out_shape)


if __name__ == "__main__":
    # Small shapes consistent with the module: T=4, B=2, C=4, H=W=16
    T, B, C, H, W = 4, 2, 4, 16, 16
    key = jax.random.PRNGKey(0)
    x_seq = jax.random.normal(key, (T * B, C, H, W), dtype=jnp.float32)

    y = expand_temporal_dim(x_seq, T)
    y = jax.block_until_ready(y)

    # Correctness check against the pure-JAX reshape reference.
    y_ref = x_seq.reshape(T, B, C, H, W)
    assert y.shape == (T, B, C, H, W)
    assert y.dtype == x_seq.dtype
    assert jnp.array_equal(y, y_ref), "mismatch vs reference reshape"

    print("KERNEL_OK")
</pallas_src>

<mosaic_0001>
module attributes {stable_mosaic.version = 11 : i64} {
  func.func @_copy_kernel(%arg0: i32, %arg1: memref<2x4096xf32, #tpu.memory_space<vmem>>, %arg2: memref<2x4096xf32, #tpu.memory_space<vmem>>) attributes {dimension_semantics = [#tpu.dimension_semantics<parallel>], iteration_bounds = array<i64: 1>, scalar_prefetch = 0 : i64, scratch_operands = 0 : i64, tpu.core_type = #tpu.core_type<tc>, window_params = [{transform_indices = @transform_0, window_bounds = array<i64: 2, 4096>}, {transform_indices = @transform_1, window_bounds = array<i64: 2, 4096>}]} {
    %c0 = arith.constant 0 : index
    %c0_0 = arith.constant 0 : index
    %0 = vector.load %arg1[%c0, %c0_0] : memref<2x4096xf32, #tpu.memory_space<vmem>>, vector<2x4096xf32>
    %c0_1 = arith.constant 0 : index
    %c0_2 = arith.constant 0 : index
    %1 = vector.load %arg2[%c0_1, %c0_2] : memref<2x4096xf32, #tpu.memory_space<vmem>>, vector<2x4096xf32>
    tpu.vector_store %arg2[%c0_1, %c0_2], %0 {strides = array<i32>} : memref<2x4096xf32, #tpu.memory_space<vmem>>, vector<2x4096xf32>,
    return
  }
  func.func @transform_0(%arg0: i32) -> (i32, i32) {
    %c0_i32 = arith.constant 0 : i32
    %c0_i32_0 = arith.constant 0 : i32
    return %arg0, %c0_i32 : i32, i32
  }
  func.func @transform_1(%arg0: i32) -> (i32, i32) {
    %c0_i32 = arith.constant 0 : i32
    %c0_i32_0 = arith.constant 0 : i32
    return %arg0, %c0_i32 : i32, i32
  }
}

</mosaic_0001>

<bundles_post_ra>
// kernel: tpu_custom_call.1
= control target key start
LH: loop header
LB: loop body
LE: loop exit
PB: predicated region body
PF: predicated region fallthrough
CT: control target
= control target key end

     0   :  { %6 = vsyncpa [#allocation3], 0  ;;  %s138_s0 = inlined_call_operand.hbm [shape: f32[2,4096], index: 0, kind: input, shape index: {}]   ;;  %s139_s1 = inlined_call_operand.hbm [shape: f32[2,4096], index: 1, kind: output, shape index: {}]  }
   0x1   :  { %7 = vsyncpa [#allocation4], 0  ;;  %s102_s6 = smov [#allocation2]   ;;  %s54_s10 = scalar_lea.hbm %s138_s0, 1024 }
   0x2   :  { %s14_s7 = sshll.u32 %s102_s6, 4  ;;  %p55_p0 = scmp.ne.s32.totalorder %s138_s0, %s54_s10  ;;  %s15_s7 = int_to_ptr.vmem [resolvable:$true] %s14_s7 }
   0x3   :  { %p58_p1 = scmp.lt.u32.totalorder %s54_s10, %s138_s0 }
   0x5   :  { %p60_p2 = pnand %p58_p1, %p55_p0 }
   0x7   :  { %63 = shalt.err (!%p60_p2)
}
   0x8   :  { %s64_s15 = scalar_lea.vmem %s15_s7, 1024  ;;  %p69_p4 = scmp.lt.s32.totalorder %s15_s7, %s15_s7 }
   0x9   :  { %p65_p3 = scmp.ne.s32.totalorder %s15_s7, %s64_s15  ;;  %p70_p5 = scmp.lt.s32.totalorder %s64_s15, %s64_s15 }
   0xb   :  { %p71_p6 = por %p70_p5, %p69_p4 }
   0xd   :  { %p72_p7 = pnand %p71_p6, %p65_p3 }
   0xf   :  { %75 = shalt.err (!%p72_p7)
}
  0x10   :  { %17 = dma.hbm_to_vmem [thread:$0]  %s138_s0, 1024, %s15_s7, [#allocation3]  }
  0x11   :  { %98 = dma.done.wait [#allocation3], 1024  }
  0x12   :  { %99 = vsyncadd [#allocation3], 4294966272  ;;  %s103_s18 = smov [#allocation5]   ;;  %v21_v0 = vld [vmem:[#allocation2] sm:$0xff]  ;;  %v22_v1 = vld [vmem:[#allocation2 + $0x8] sm:$0xff] }
  0x13   :  { %s43_s19 = sshll.u32 %s103_s18, 4  ;;  %v23_v2 = vld [vmem:[#allocation2 + $0x10] sm:$0xff]  ;;  %29 = vst [vmem:[#allocation5] sm:$0xff] %v21_v0  ;;  %30 = vst [vmem:[#allocation5 + $0x8] sm:$0xff] %v22_v1  ;;  %v24_v3 = vld [vmem:[#allocation2 + $0x18] sm:$0xff]  ;;  %s44_s19 = int_to_ptr.vmem [resolvable:$true] %s43_s19 }
  0x14   :  { %31 = vst [vmem:[#allocation5 + $0x10] sm:$0xff] %v23_v2  ;;  %v25_v4 = vld [vmem:[#allocation2 + $0x20] sm:$0xff]  ;;  %v26_v5 = vld [vmem:[#allocation2 + $0x28] sm:$0xff]  ;;  %32 = vst [vmem:[#allocation5 + $0x18] sm:$0xff] %v24_v3  ;;  %s76_s0 = scalar_lea.vmem %s44_s19, 1024  ;;  %p81_p9 = scmp.lt.s32.totalorder %s44_s19, %s44_s19 }
  0x15   :  { %33 = vst [vmem:[#allocation5 + $0x20] sm:$0xff] %v25_v4  ;;  %34 = vst [vmem:[#allocation5 + $0x28] sm:$0xff] %v26_v5  ;;  %v27_v6 = vld [vmem:[#allocation2 + $0x30] sm:$0xff]  ;;  %v28_v7 = vld [vmem:[#allocation2 + $0x38] sm:$0xff]  ;;  %p77_p8 = scmp.ne.s32.totalorder %s44_s19, %s76_s0  ;;  %p82_p10 = scmp.lt.s32.totalorder %s76_s0, %s76_s0 }
  0x16   :  { %35 = vst [vmem:[#allocation5 + $0x30] sm:$0xff] %v27_v6  ;;  %36 = vst [vmem:[#allocation5 + $0x38] sm:$0xff] %v28_v7 }
  0x17   :  { %p83_p11 = por %p82_p10, %p81_p9 }
  0x19   :  { %p84_p12 = pnand %p83_p11, %p77_p8 }
  0x1b   :  { %87 = shalt.err (!%p84_p12)
}
  0x1c   :  { %s88_s22 = scalar_lea.hbm %s139_s1, 1024 }
  0x1d   :  { %p89_p13 = scmp.ne.s32.totalorder %s139_s1, %s88_s22  ;;  %p92_p0 = scmp.lt.u32.totalorder %s88_s22, %s139_s1 }
  0x1f   :  { %p94_p1 = pnand %p92_p0, %p89_p13 }
  0x21   :  { %97 = shalt.err (!%p94_p1)
}
  0x22   :  { %46 = dma.vmem_to_hbm [thread:$0]  %s44_s19, 1024, %s139_s1, [#allocation4]  }
  0x23   :  { %100 = dma.done.wait [#allocation4], 1024  }
  0x24   :  { %101 = vsyncadd [#allocation4], 4294966272 }
  0x25   :  { %50 = vsyncpa [#allocation3], 1 }
  0x26   :  { %51 = vsyncpa [#allocation4], 1 }

</bundles_post_ra>
